<compile_context>
chip_gen: v5e
topology: v5e:2x2
jax: 0.10.0
libtpu: 0.0.40
codegen_flags: <defaults>
</compile_context>

<pallas_src>
import functools

import numpy as np
import jax
import jax.numpy as jnp
from jax.experimental import pallas as pl
from jax.experimental.pallas import tpu as pltpu

COMPUTE_DTYPE = jnp.bfloat16     # MXU operand dtype; accumulation stays f32


def _round_up(x, m):
    return ((x + m - 1) // m) * m


# ----------------------------------------------------------------------------
# Tiled linear (bias + activation fused in the epilogue)
# ----------------------------------------------------------------------------
def _matmul_kernel(x_ref, w_ref, b_ref, o_ref, acc_ref, *, activation, compute_dtype):
    @pl.when(pl.program_id(2) == 0)
    def _():
        acc_ref[...] = jnp.zeros_like(acc_ref)

    acc_ref[...] += jnp.dot(x_ref[...].astype(compute_dtype), w_ref[...],
                            preferred_element_type=jnp.float32)

    @pl.when(pl.program_id(2) == pl.num_programs(2) - 1)
    def _():
        y = acc_ref[...] + b_ref[...]
        if activation == "relu":
            y = jnp.maximum(y, 0.0)
        elif activation == "gelu":
            y = jax.nn.gelu(y)
        o_ref[...] = y.astype(o_ref.dtype)


def pallas_linear(x, w, b, activation=None, compute_dtype=COMPUTE_DTYPE,
                  tm_max=512, tn_max=256, tk_max=512):
    """x:[M,K] @ w:[K,N] + b -> [M,N]; K-tiled with an f32 VMEM accumulator.

    Tile caps are conservative so double-buffered bf16 inputs + f32 accumulator
    fit the 32 MiB default scoped VMEM on every generation (incl. v7x 64 MiB);
    M/N grid axes are "parallel" so work shards across both v7x TensorCores.
    """
    M, K = x.shape
    _, N = w.shape
    tm = min(tm_max, _round_up(M, 8))
    tk = min(tk_max, _round_up(K, 128))
    tn = min(tn_max, _round_up(N, 128))
    Mp, Kp, Np = _round_up(M, tm), _round_up(K, tk), _round_up(N, tn)

    xp = x if (Mp == M and Kp == K) else jnp.pad(x, ((0, Mp - M), (0, Kp - K)))
    wp = w if w.dtype == compute_dtype else w.astype(compute_dtype)
    if (Kp, Np) != (K, N):
        wp = jnp.pad(wp, ((0, Kp - K), (0, Np - N)))
    bp = b.astype(jnp.float32).reshape(1, N)
    if Np != N:
        bp = jnp.pad(bp, ((0, 0), (0, Np - N)))

    out = pl.pallas_call(
        functools.partial(_matmul_kernel, activation=activation,
                          compute_dtype=compute_dtype),
        out_shape=jax.ShapeDtypeStruct((Mp, Np), x.dtype),
        grid=(Mp // tm, Np // tn, Kp // tk),
        in_specs=[pl.BlockSpec((tm, tk), lambda i, j, k: (i, k)),
                  pl.BlockSpec((tk, tn), lambda i, j, k: (k, j)),
                  pl.BlockSpec((1, tn), lambda i, j, k: (0, j))],
        out_specs=pl.BlockSpec((tm, tn), lambda i, j, k: (i, j)),
        scratch_shapes=[pltpu.VMEM((tm, tn), jnp.float32)],
        compiler_params=pltpu.CompilerParams(
            dimension_semantics=("parallel", "parallel", "arbitrary")),
    )(xp, wp, bp)
    if (Mp, Np) != (M, N):
        out = out[:M, :N]
    return out


# ----------------------------------------------------------------------------
# LayerNorm (tiled over rows) and fused residual-add + LayerNorm
# ----------------------------------------------------------------------------
def _layernorm_kernel(x_ref, g_ref, b_ref, o_ref, *, eps):
    x = x_ref[...].astype(jnp.float32)
    mu = jnp.mean(x, axis=-1, keepdims=True)
    var = jnp.mean(jnp.square(x - mu), axis=-1, keepdims=True)
    y = (x - mu) * jax.lax.rsqrt(var + eps)
    o_ref[...] = (y * g_ref[...] + b_ref[...]).astype(o_ref.dtype)


def pallas_layernorm(x, gamma, beta, eps=1e-5, tm_max=1024):
    M, C = x.shape
    tm = min(tm_max, _round_up(M, 8))
    Mp = _round_up(M, tm)
    xp = x if Mp == M else jnp.pad(x, ((0, Mp - M), (0, 0)))
    out = pl.pallas_call(
        functools.partial(_layernorm_kernel, eps=eps),
        out_shape=jax.ShapeDtypeStruct((Mp, C), x.dtype),
        grid=(Mp // tm,),
        in_specs=[pl.BlockSpec((tm, C), lambda i: (i, 0)),
                  pl.BlockSpec((1, C), lambda i: (0, 0)),
                  pl.BlockSpec((1, C), lambda i: (0, 0))],
        out_specs=pl.BlockSpec((tm, C), lambda i: (i, 0)),
        compiler_params=pltpu.CompilerParams(dimension_semantics=("parallel",)),
    )(xp, gamma.reshape(1, C).astype(jnp.float32), beta.reshape(1, C).astype(jnp.float32))
    return out[:M] if Mp != M else out


def _add_layernorm_kernel(y_ref, r_ref, g_ref, b_ref, o_ref, *, eps):
    y = y_ref[...].astype(jnp.float32)
    mu = jnp.mean(y, axis=-1, keepdims=True)
    var = jnp.mean(jnp.square(y - mu), axis=-1, keepdims=True)
    yn = (y - mu) * jax.lax.rsqrt(var + eps)
    o_ref[...] = (r_ref[...].astype(jnp.float32) + yn * g_ref[...]
                  + b_ref[...]).astype(o_ref.dtype)


def pallas_add_layernorm(y, residual, gamma, beta, eps=1e-5, tm_max=1024):
    """out = residual + LayerNorm(y)  (SwinV2 res-post-norm), fused."""
    M, C = y.shape
    tm = min(tm_max, _round_up(M, 8))
    Mp = _round_up(M, tm)
    yp = y if Mp == M else jnp.pad(y, ((0, Mp - M), (0, 0)))
    rp = residual if Mp == M else jnp.pad(residual, ((0, Mp - M), (0, 0)))
    out = pl.pallas_call(
        functools.partial(_add_layernorm_kernel, eps=eps),
        out_shape=jax.ShapeDtypeStruct((Mp, C), y.dtype),
        grid=(Mp // tm,),
        in_specs=[pl.BlockSpec((tm, C), lambda i: (i, 0)),
                  pl.BlockSpec((tm, C), lambda i: (i, 0)),
                  pl.BlockSpec((1, C), lambda i: (0, 0)),
                  pl.BlockSpec((1, C), lambda i: (0, 0))],
        out_specs=pl.BlockSpec((tm, C), lambda i: (i, 0)),
        compiler_params=pltpu.CompilerParams(dimension_semantics=("parallel",)),
    )(yp, rp, gamma.reshape(1, C).astype(jnp.float32), beta.reshape(1, C).astype(jnp.float32))
    return out[:M] if Mp != M else out


# ----------------------------------------------------------------------------
# Window cosine attention: all windows of one image per grid step
# ----------------------------------------------------------------------------
def _window_attn_kernel(qkv_ref, bias_ref, scale_ref, *rest,
                        nh, hd, has_mask, compute_dtype):
    if has_mask:
        mask_ref, o_ref = rest
    else:
        (o_ref,) = rest
    C = nh * hd
    qkv = qkv_ref[0]                                   # [nw, T, 3C]
    outs = []
    for h in range(nh):                                # static unroll over heads
        q = qkv[:, :, h * hd:(h + 1) * hd]
        k = qkv[:, :, C + h * hd:C + (h + 1) * hd]
        v = qkv[:, :, 2 * C + h * hd:2 * C + (h + 1) * hd]
        qf = q.astype(jnp.float32)
        kf = k.astype(jnp.float32)
        # cosine-similarity logits; MXU operands in bf16, f32 accumulation
        logits = jnp.einsum("wqd,wkd->wqk",
                            q.astype(compute_dtype), k.astype(compute_dtype),
                            preferred_element_type=jnp.float32)
        q_inv = jax.lax.rsqrt(jnp.sum(qf * qf, axis=-1, keepdims=True) + 1e-12)
        k_inv = jax.lax.rsqrt(jnp.sum(kf * kf, axis=-1, keepdims=True) + 1e-12)
        logits = logits * q_inv * jnp.swapaxes(k_inv, -2, -1)
        logits = logits * scale_ref[h][None] + bias_ref[h][None]   # 1/clamp(tau) , CPB bias
        if has_mask:
            logits = logits + mask_ref[...]                        # [nw, T, T]
        logits = logits - jnp.max(logits, axis=-1, keepdims=True)
        p = jnp.exp(logits)
        p = p * pl.reciprocal(jnp.sum(p, axis=-1, keepdims=True), approx=True)
        outs.append(jnp.einsum("wqk,wkd->wqd",
                               p.astype(compute_dtype), v.astype(compute_dtype),
                               preferred_element_type=jnp.float32))
    o_ref[0] = jnp.concatenate(outs, axis=-1).astype(o_ref.dtype)  # [nw, T, C]


def pallas_window_attention(qkv, bias, scale_b, mask, nh, hd,
                            compute_dtype=COMPUTE_DTYPE):
    """qkv: [B, nw, T, 3C]; bias/scale_b: [nh, T, T]; mask: [nw, T, T] or None.
    Returns [B, nw, T, C] (head-concatenated), ready for the output projection
    with no extra transpose in HBM."""
    B, nw, T, _ = qkv.shape
    C = nh * hd
    in_specs = [pl.BlockSpec((1, nw, T, 3 * C), lambda b: (b, 0, 0, 0)),
                pl.BlockSpec((nh, T, T), lambda b: (0, 0, 0)),
                pl.BlockSpec((nh, T, T), lambda b: (0, 0, 0))]
    args = [qkv, bias.astype(jnp.float32), scale_b.astype(jnp.float32)]
    if mask is not None:
        in_specs.append(pl.BlockSpec((nw, T, T), lambda b: (0, 0, 0)))
        args.append(mask.astype(jnp.float32))
    kern = functools.partial(_window_attn_kernel, nh=nh, hd=hd,
                             has_mask=mask is not None, compute_dtype=compute_dtype)
    return pl.pallas_call(
        kern,
        out_shape=jax.ShapeDtypeStruct((B, nw, T, C), qkv.dtype),
        grid=(B,),
        in_specs=in_specs,
        out_specs=pl.BlockSpec((1, nw, T, C), lambda b: (b, 0, 0, 0)),
        compiler_params=pltpu.CompilerParams(dimension_semantics=("parallel",)),
    )(*args)


# ----------------------------------------------------------------------------
# Final LayerNorm + global mean pool (fused)
# ----------------------------------------------------------------------------
def _norm_pool_kernel(x_ref, g_ref, b_ref, o_ref, *, eps):
    x = x_ref[0].astype(jnp.float32)        # [HW, C]
    mu = jnp.mean(x, axis=-1, keepdims=True)
    var = jnp.mean(jnp.square(x - mu), axis=-1, keepdims=True)
    y = (x - mu) * jax.lax.rsqrt(var + eps)
    y = y * g_ref[...] + b_ref[...]
    o_ref[...] = jnp.mean(y, axis=0, keepdims=True).astype(o_ref.dtype)


def pallas_norm_mean_pool(x, gamma, beta, eps=1e-5):
    B, HW, C = x.shape
    return pl.pallas_call(
        functools.partial(_norm_pool_kernel, eps=eps),
        out_shape=jax.ShapeDtypeStruct((B, C), x.dtype),
        grid=(B,),
        in_specs=[pl.BlockSpec((1, HW, C), lambda i: (i, 0, 0)),
                  pl.BlockSpec((1, C), lambda i: (0, 0)),
                  pl.BlockSpec((1, C), lambda i: (0, 0))],
        out_specs=pl.BlockSpec((1, C), lambda i: (i, 0)),
        compiler_params=pltpu.CompilerParams(dimension_semantics=("parallel",)),
    )(x, gamma.reshape(1, C).astype(jnp.float32), beta.reshape(1, C).astype(jnp.float32))


# ----------------------------------------------------------------------------
# Glue: window partition/reverse, shift masks, CPB bias (setup-time constants)
# ----------------------------------------------------------------------------
def window_partition(x, ws):
    B, H, W, C = x.shape
    x = x.reshape(B, H // ws, ws, W // ws, ws, C).transpose(0, 1, 3, 2, 4, 5)
    return x.reshape(B, (H // ws) * (W // ws), ws * ws, C)          # [B, nw, T, C]


def window_reverse(xw, ws, B, H, W):
    C = xw.shape[-1]
    x = xw.reshape(B, H // ws, W // ws, ws, ws, C).transpose(0, 1, 3, 2, 4, 5)
    return x.reshape(B, H, W, C)


def make_shift_mask(H, W, ws, shift):
    img = np.zeros((H, W), np.float32)
    cnt = 0
    for hs in (slice(0, -ws), slice(-ws, -shift), slice(-shift, None)):
        for wsl in (slice(0, -ws), slice(-ws, -shift), slice(-shift, None)):
            img[hs, wsl] = cnt
            cnt += 1
    m = img.reshape(H // ws, ws, W // ws, ws).transpose(0, 2, 1, 3).reshape(-1, ws * ws)
    diff = m[:, None, :] - m[:, :, None]
    return jnp.asarray(np.where(diff != 0, -100.0, 0.0).astype(np.float32))  # [nw, T, T]


def relative_position_bias(p, ws, nh):
    # log1p relative coordinates through the CPB meta network (raw output, as
    # in the ChristophReich1996 SwinV2 repo this classifier wraps).
    idx = np.arange(ws)
    coords = np.stack(np.meshgrid(idx, idx, indexing="ij"), axis=0).reshape(2, -1)
    rel = (coords[:, :, None] - coords[:, None, :]).transpose(1, 2, 0).reshape(-1, 2)
    rel = rel.astype(np.float32)
    rel_log = jnp.asarray(np.sign(rel) * np.log1p(np.abs(rel)))
    h = pallas_linear(rel_log, p["meta_w1"], p["meta_b1"], activation="relu")
    bias = pallas_linear(h, p["meta_w2"], p["meta_b2"])              # [T*T, nh]
    T = ws * ws
    return bias.T.reshape(nh, T, T)


def precompute_block_constants(params, cfg):
    """Hoists CPB bias, 1/clamp(tau) scale and shift masks out of the forward."""
    P = cfg["patch_size"]
    H0, W0 = cfg["input_resolution"][0] // P, cfg["input_resolution"][1] // P
    all_consts = []
    for si, stage in enumerate(params["stages"]):
        H, W = H0 // (2 ** si), W0 // (2 ** si)
        nh = cfg["number_of_heads"][si]
        stage_consts = []
        for bi, blk in enumerate(stage["blocks"]):
            ws = cfg["window_size"]
            shift = 0 if bi % 2 == 0 else ws // 2
            if min(H, W) <= ws:                      # clamp like the reference impl
                ws, shift = min(H, W), 0
            T = ws * ws
            bias = relative_position_bias(blk, ws, nh)               # [nh, T, T]
            scale = (1.0 / jnp.maximum(blk["tau"].astype(jnp.float32), 0.01)).reshape(nh, 1, 1)
            scale_b = jnp.broadcast_to(scale, (nh, T, T)).astype(jnp.float32)
            mask = make_shift_mask(H, W, ws, shift) if shift > 0 else None
            stage_consts.append(dict(ws=ws, shift=shift, bias=bias,
                                     scale_b=scale_b, mask=mask))
        all_consts.append(stage_consts)
    return all_consts


# ----------------------------------------------------------------------------
# Model forward
# ----------------------------------------------------------------------------
def patch_embedding(x, p, patch_size):
    B, Cin, H, W = x.shape
    P = patch_size
    hp, wp = H // P, W // P
    patches = (x.reshape(B, Cin, hp, P, wp, P)
                 .transpose(0, 2, 4, 1, 3, 5)
                 .reshape(B * hp * wp, Cin * P * P))
    w = p["conv_w"].reshape(p["conv_w"].shape[0], -1).T              # [Cin*P*P, Cout]
    y = pallas_linear(patches, w, p["conv_b"])
    y = pallas_layernorm(y, p["norm_g"], p["norm_b"])
    return y.reshape(B, hp, wp, -1)


def patch_merging(x, p):
    B, H, W, C = x.shape
    x = x.reshape(B, H // 2, 2, W // 2, 2, C).transpose(0, 1, 3, 5, 2, 4)
    x = x.reshape(B * (H // 2) * (W // 2), 4 * C)
    x = pallas_layernorm(x, p["norm_g"], p["norm_b"])
    y = pallas_linear(x, p["w"], p["b"])                              # 4C -> 2C
    return y.reshape(B, H // 2, W // 2, 2 * C)


def swin_block_forward(x, p, consts, nh):
    B, H, W, C = x.shape
    ws, shift = consts["ws"], consts["shift"]
    T = ws * ws
    hd = C // nh

    shortcut = x
    xs = jnp.roll(x, shift=(-shift, -shift), axis=(1, 2)) if shift > 0 else x
    xw = window_partition(xs, ws)                                    # [B, nw, T, C]
    nw = xw.shape[1]

    qkv = pallas_linear(xw.reshape(B * nw * T, C), p["qkv_w"], p["qkv_b"])
    qkv = qkv.reshape(B, nw, T, 3 * C)                               # no head transpose in HBM
    attn = pallas_window_attention(qkv, consts["bias"], consts["scale_b"],
                                   consts["mask"], nh, hd)           # [B, nw, T, C]
    attn = pallas_linear(attn.reshape(B * nw * T, C), p["proj_w"], p["proj_b"])
    attn = window_reverse(attn.reshape(B, nw, T, C), ws, B, H, W)
    if shift > 0:
        attn = jnp.roll(attn, shift=(shift, shift), axis=(1, 2))

    # SwinV2 res-post-norm residuals (drop-path / dropout are identity at eval)
    x1 = pallas_add_layernorm(attn.reshape(B * H * W, C), shortcut.reshape(B * H * W, C),
                              p["n1_g"], p["n1_b"]).reshape(B, H, W, C)

    y = pallas_linear(x1.reshape(B * H * W, C), p["mlp_w1"], p["mlp_b1"], activation="gelu")
    y = pallas_linear(y, p["mlp_w2"], p["mlp_b2"])
    x2 = pallas_add_layernorm(y, x1.reshape(B * H * W, C),
                              p["n2_g"], p["n2_b"]).reshape(B, H, W, C)
    return x2


def swin_classifier_forward(params, consts, x, cfg):
    x = patch_embedding(x, params["patch_embed"], cfg["patch_size"])
    for si, stage in enumerate(params["stages"]):
        if si != 0:
            x = patch_merging(x, stage["merge"])
        nh = cfg["number_of_heads"][si]
        for bi, blk in enumerate(stage["blocks"]):
            x = swin_block_forward(x, blk, consts[si][bi], nh)

    B, H, W, C = x.shape
    pooled = pallas_norm_mean_pool(x.reshape(B, H * W, C), params["norm_g"], params["norm_b"])
    # TODO(synk): feature_scaling (affine-free LayerNorm + Dropout(0.1)) is training-only; omitted in eval path.
    return pallas_linear(pooled, params["head_w"], params["head_b"])  # [B, num_classes]


# ----------------------------------------------------------------------------
# Deterministic parameter init (trunc_normal(std=0.02) approximated by normal)
# ----------------------------------------------------------------------------
def init_params(key, cfg):
    emb = cfg["embedding_channels"]
    depths, heads = cfg["depths"], cfg["number_of_heads"]
    mh, ff = cfg["meta_hidden"], cfg["ff_feature_ratio"]
    keys = iter(jax.random.split(key, 1024))

    def lin(i, o):
        return 0.02 * jax.random.normal(next(keys), (i, o), jnp.float32)

    P, Cin = cfg["patch_size"], cfg["in_channels"]
    params = {
        "patch_embed": dict(
            conv_w=0.02 * jax.random.normal(next(keys), (emb, Cin, P, P), jnp.float32),
            conv_b=jnp.zeros((emb,), jnp.float32),
            norm_g=jnp.ones((emb,), jnp.float32), norm_b=jnp.zeros((emb,), jnp.float32)),
        "stages": [],
    }
    for si, (d, nh) in enumerate(zip(depths, heads)):
        C = emb * (2 ** si)
        stage = {}
        if si != 0:
            Cp = emb * (2 ** (si - 1))
            stage["merge"] = dict(norm_g=jnp.ones((4 * Cp,)), norm_b=jnp.zeros((4 * Cp,)),
                                  w=lin(4 * Cp, 2 * Cp), b=jnp.zeros((2 * Cp,), jnp.float32))
        stage["blocks"] = [dict(
            qkv_w=lin(C, 3 * C), qkv_b=jnp.zeros((3 * C,)),
            proj_w=lin(C, C), proj_b=jnp.zeros((C,)),
            meta_w1=lin(2, mh), meta_b1=jnp.zeros((mh,)),
            meta_w2=lin(mh, nh), meta_b2=jnp.zeros((nh,)),
            tau=jnp.ones((nh,), jnp.float32),
            n1_g=jnp.ones((C,)), n1_b=jnp.zeros((C,)),
            n2_g=jnp.ones((C,)), n2_b=jnp.zeros((C,)),
            mlp_w1=lin(C, ff * C), mlp_b1=jnp.zeros((ff * C,)),
            mlp_w2=lin(ff * C, C), mlp_b2=jnp.zeros((C,)),
        ) for _ in range(d)]
        params["stages"].append(stage)

    Clast = emb * (2 ** (len(depths) - 1))
    params["norm_g"] = jnp.ones((Clast,), jnp.float32)
    params["norm_b"] = jnp.zeros((Clast,), jnp.float32)
    params["head_w"] = lin(Clast, cfg["num_classes"])
    params["head_b"] = jnp.zeros((cfg["num_classes"],), jnp.float32)
    return params


def cast_weights(obj, dtype=COMPUTE_DTYPE):
    """Store all matmul weight matrices in bf16 once at setup (MXU operands)."""
    if isinstance(obj, dict):
        out = {}
        for k, v in obj.items():
            if isinstance(v, (dict, list, tuple)):
                out[k] = cast_weights(v, dtype)
            elif ("_w" in k or k == "w") and getattr(v, "ndim", 0) >= 2:
                out[k] = v.astype(dtype)
            else:
                out[k] = v
        return out
    if isinstance(obj, (list, tuple)):
        return [cast_weights(v, dtype) for v in obj]
    return obj


if __name__ == "__main__":
    cfg = dict(in_channels=3, embedding_channels=16, depths=(2, 2),
               input_resolution=(16, 16), number_of_heads=(2, 4),
               window_size=2, patch_size=4, ff_feature_ratio=4,
               num_classes=10, meta_hidden=32)

    key = jax.random.PRNGKey(0)
    pkey, xkey = jax.random.split(key)
    params = init_params(pkey, cfg)
    params = cast_weights(params, COMPUTE_DTYPE)           # bf16 matmul weights
    consts = precompute_block_constants(params, cfg)       # CPB bias / tau / masks hoisted
    x = jax.random.normal(xkey, (2, cfg["in_channels"], 16, 16), jnp.float32)  # NCHW input

    fwd = jax.jit(lambda inp: swin_classifier_forward(params, consts, inp, cfg))
    logits = jax.block_until_ready(fwd(x))
    assert logits.shape == (2, cfg["num_classes"])
    assert bool(jnp.all(jnp.isfinite(logits)))
    print("KERNEL_OK")
</pallas_src>

<mosaic_0001>
module attributes {stable_mosaic.version = 11 : i64} {
  func.func @_matmul_kernel(%arg0: i32, %arg1: i32, %arg2: i32, %arg3: memref<16x128xf32, #tpu.memory_space<vmem>>, %arg4: memref<128x128xbf16, #tpu.memory_space<vmem>>, %arg5: memref<1x128xf32, #tpu.memory_space<vmem>>, %arg6: memref<16x128xf32, #tpu.memory_space<vmem>>, %arg7: memref<16x128xf32, #tpu.memory_space<vmem>>) attributes {dimension_semantics = [#tpu.dimension_semantics<parallel>, #tpu.dimension_semantics<parallel>, #tpu.dimension_semantics<arbitrary>], iteration_bounds = array<i64: 1, 1, 1>, scalar_prefetch = 0 : i64, scratch_operands = 1 : i64, tpu.core_type = #tpu.core_type<tc>, window_params = [{transform_indices = @transform_0, window_bounds = array<i64: 16, 128>}, {transform_indices = @transform_1, window_bounds = array<i64: 128, 128>}, {transform_indices = @transform_2, window_bounds = array<i64: 1, 128>}, {transform_indices = @transform_3, window_bounds = array<i64: 16, 128>}]} {
    %c0_i32 = arith.constant 0 : i32
    %0 = arith.cmpi eq, %arg2, %c0_i32 : i32
    %1 = arith.extui %0 : i1 to i32
    %c0_i32_0 = arith.constant 0 : i32
    %2 = arith.cmpi ne, %1, %c0_i32_0 : i32
    scf.if %2 {
      %cst_10 = arith.constant 0.000000e+00 : f32
      %13 = vector.broadcast %cst_10 : f32 to vector<16x128xf32>
      %c0_11 = arith.constant 0 : index
      %c0_12 = arith.constant 0 : index
      %14 = vector.load %arg7[%c0_11, %c0_12] : memref<16x128xf32, #tpu.memory_space<vmem>>, vector<16x128xf32>
      tpu.vector_store %arg7[%c0_11, %c0_12], %13 {strides = array<i32>} : memref<16x128xf32, #tpu.memory_space<vmem>>, vector<16x128xf32>,
    } else {
    }
    %c0 = arith.constant 0 : index
    %c0_1 = arith.constant 0 : index
    %3 = vector.load %arg7[%c0, %c0_1] : memref<16x128xf32, #tpu.memory_space<vmem>>, vector<16x128xf32>
    %c0_2 = arith.constant 0 : index
    %c0_3 = arith.constant 0 : index
    %4 = vector.load %arg3[%c0_2, %c0_3] : memref<16x128xf32, #tpu.memory_space<vmem>>, vector<16x128xf32>
    %5 = arith.truncf %4 : vector<16x128xf32> to vector<16x128xbf16>
    %c0_4 = arith.constant 0 : index
    %c0_5 = arith.constant 0 : index
    %6 = vector.load %arg4[%c0_4, %c0_5] : memref<128x128xbf16, #tpu.memory_space<vmem>>, vector<128x128xbf16>
    %cst = arith.constant dense<0.000000e+00> : vector<16x128xf32>
    %7 = tpu.matmul %5, %6, %cst {dimension_numbers = #tpu.dot_dimension_numbers<[1], [0], [0], [1], [0, 0, 1, 1], [], []>} : vector<16x128xbf16>, vector<128x128xbf16>, vector<16x128xf32> -> vector<16x128xf32>
    %8 = arith.addf %3, %7 : vector<16x128xf32>
    %c0_6 = arith.constant 0 : index
    %c0_7 = arith.constant 0 : index
    %9 = vector.load %arg7[%c0_6, %c0_7] : memref<16x128xf32, #tpu.memory_space<vmem>>, vector<16x128xf32>
    tpu.vector_store %arg7[%c0_6, %c0_7], %8 {strides = array<i32>} : memref<16x128xf32, #tpu.memory_space<vmem>>, vector<16x128xf32>,
    %c0_i32_8 = arith.constant 0 : i32
    %10 = arith.cmpi eq, %arg2, %c0_i32_8 : i32
    %11 = arith.extui %10 : i1 to i32
    %c0_i32_9 = arith.constant 0 : i32
    %12 = arith.cmpi ne, %11, %c0_i32_9 : i32
    scf.if %12 {
      %c0_10 = arith.constant 0 : index
      %c0_11 = arith.constant 0 : index
      %13 = vector.load %arg7[%c0_10, %c0_11] : memref<16x128xf32, #tpu.memory_space<vmem>>, vector<16x128xf32>
      %c0_12 = arith.constant 0 : index
      %c0_13 = arith.constant 0 : index
      %14 = vector.load %arg5[%c0_12, %c0_13] : memref<1x128xf32, #tpu.memory_space<vmem>>, vector<1x128xf32>
      %15 = vector.broadcast %14 : vector<1x128xf32> to vector<16x128xf32>
      %16 = arith.addf %13, %15 : vector<16x128xf32>
      %cst_14 = arith.constant 0.000000e+00 : f32
      %17 = vector.broadcast %cst_14 : f32 to vector<16x128xf32>
      %18 = arith.maximumf %16, %17 : vector<16x128xf32>
      %c0_15 = arith.constant 0 : index
      %c0_16 = arith.constant 0 : index
      %19 = vector.load %arg6[%c0_15, %c0_16] : memref<16x128xf32, #tpu.memory_space<vmem>>, vector<16x128xf32>
      tpu.vector_store %arg6[%c0_15, %c0_16], %18 {strides = array<i32>} : memref<16x128xf32, #tpu.memory_space<vmem>>, vector<16x128xf32>,
    } else {
    }
    return
  }
  func.func @transform_0(%arg0: i32, %arg1: i32, %arg2: i32) -> (i32, i32) {
    %c0_i32 = arith.constant 0 : i32
    return %arg0, %arg2 : i32, i32
  }
  func.func @transform_1(%arg0: i32, %arg1: i32, %arg2: i32) -> (i32, i32) {
    %c0_i32 = arith.constant 0 : i32
    return %arg2, %arg1 : i32, i32
  }
  func.func @transform_2(%arg0: i32, %arg1: i32, %arg2: i32) -> (i32, i32) {
    %c0_i32 = arith.constant 0 : i32
    %c0_i32_0 = arith.constant 0 : i32
    return %c0_i32, %arg1 : i32, i32
  }
  func.func @transform_3(%arg0: i32, %arg1: i32, %arg2: i32) -> (i32, i32) {
    %c0_i32 = arith.constant 0 : i32
    return %arg0, %arg1 : i32, i32
  }
}

</mosaic_0001>

<bundles_post_ra>
// kernel: tpu_custom_call.1
= control target key start
LH: loop header
LB: loop body
LE: loop exit
PB: predicated region body
PF: predicated region fallthrough
CT: control target
= control target key end

     0   :  { %8 = vsyncpa [#allocation4], 0  ;;  %s346_s0 = inlined_call_operand.hbm [shape: f32[16,128], index: 0, kind: input, shape index: {}]   ;;  %s347_s1 = inlined_call_operand.hbm [shape: bf16[128,128], index: 1, kind: input, shape index: {}]   ;;  %s348_s2 = inlined_call_operand.vmem [shape: f32[1,128], index: 2, kind: input, shape index: {}]   ;;  %s349_s3 = inlined_call_operand.hbm [shape: f32[16,128], index: 3, kind: output, shape index: {}]  }
   0x1   :  { %9 = vsyncpa [#allocation7], 0 }
   0x2   :  { %10 = vsyncpa [#allocation5], 0  ;;  %s15_s14 = sshll.u32 %s346_s0, 4  ;;  %s301_s15 = smov [#allocation3]   ;;  %s16_s14 = int_to_ptr.hbm [resolvable:$true] %s15_s14 }
   0x3   :  { %s17_s16 = sshll.u32 %s301_s15, 4  ;;  %s28_s19 = sshll.u32 %s347_s1, 4  ;;  %s18_s16 = int_to_ptr.vmem [resolvable:$true] %s17_s16  ;;  %s29_s19 = int_to_ptr.hbm [resolvable:$true] %s28_s19 }
   0x4   :  { %s302_s20 = smov 128   ;;  %s303_s21 = smov 8  }
   0x5   :  { %23 = dma.hbm_to_vmem [thread:$0]  %s16_s14, 256, %s18_s16, [#allocation4], %s302_s20, %s302_s20, %s303_s21  }
   0x6   :  { %s304_s22 = smov [#allocation6]   ;;  %s305_s24 = smov 64  }
   0x7   :  { %s30_s23 = sshll.u32 %s304_s22, 4  ;;  %s306_s0 = smov 4   ;;  %s31_s23 = int_to_ptr.vmem [resolvable:$true] %s30_s23 }
   0x8   :  { %36 = dma.hbm_to_vmem [thread:$0]  %s29_s19, 1024, %s31_s23, [#allocation7], %s305_s24, %s305_s24, %s306_s0  }
   0x9   :  { %295 = dma.done.wait [#allocation4], 256  }
   0xa   :  { %296 = vsyncadd [#allocation4], 4294967040 }
   0xb   :  { %297 = dma.done.wait [#allocation7], 1024  }
   0xc   :  { %298 = vsyncadd [#allocation7], 4294966272  ;;  %v214_v0 = vld [vmem:[#allocation6 + $0x38] sm:$0xff]  ;;  %v213_v1 = vld [vmem:[#allocation6 + $0x30] sm:$0xff]  ;;  %s307_s26 = smov [#allocation8]   ;;  %s161_s30 = sshll.u32 %s349_s3, 4  ;;  %s162_s30 = int_to_ptr.hbm [resolvable:$true] %s161_s30 }
   0xd   :  { %122 = vmatpush.bf16.msra.mxu0 %v214_v0  ;;  %v212_v2 = vld [vmem:[#allocation6 + $0x28] sm:$0xff]  ;;  %v211_v3 = vld [vmem:[#allocation6 + $0x20] sm:$0xff]  ;;  %v210_v4 = vld [vmem:[#allocation6 + $0x18] sm:$0xff]  ;;  %s159_s27 = sshll.u32 %s307_s26, 4  ;;  %s160_s27 = int_to_ptr.vmem [resolvable:$true] %s159_s27 }
   0xe   :  { %v209_v5 = vld [vmem:[#allocation6 + $0x10] sm:$0xff]  ;;  %v208_v6 = vld [vmem:[#allocation6 + $0x8] sm:$0xff]  ;;  %v207_v7 = vld [vmem:[#allocation6] sm:$0xff] }
   0xf   :  { %v55_v8 = vld [vmem:[#allocation3] sm:$0xff]  ;;  %v56_v9 = vld [vmem:[#allocation3 + $0x8] sm:$0xff] }
  0x10   :  { %v57_v10 = vpack.c.bf16 %v56_v9, %v55_v8  ;;  %v222_v11 = vld [vmem:[%s348_s2] ss:$0 sm:$0xff] }
  0x11   :  { %123 = vmatpush.bf16.msra.mxu0 %v213_v1 }
  0x15   :  { %124 = vmatpush.bf16.msra.mxu0 %v212_v2 }
  0x19   :  { %125 = vmatpush.bf16.msra.mxu0 %v211_v3 }
  0x1d   :  { %126 = vmatpush.bf16.msra.mxu0 %v210_v4 }
  0x21   :  { %127 = vmatpush.bf16.msra.mxu0 %v209_v5 }
  0x25   :  { %128 = vmatpush.bf16.msra.mxu0 %v208_v6 }
  0x29   :  { %129 = vmatpush.bf16.msra.mxu0 %v207_v7 }
  0x2c   :  { %130 = vmatmul.bf16.vlgmr.msra.gmra.mxu0 %v57_v10 }
  0xa9   :  { %v131_v12 = vpop.f32.mrf.mxu0 }
  0xaa   :  { %v149_v13 = vadd.f32 %v222_v11, %v131_v12 }
  0xac   :  { %v151_v14 = vmax.f32 %v149_v13, 0.0 }
  0xae   :  { %153 = vst [vmem:[#allocation8] sm:$0xff] %v151_v14 }
  0xb1   :  { %v133_v15 = vpop.f32.mrf.mxu0 }
  0xb2   :  { %v150_v16 = vadd.f32 %v222_v11, %v133_v15 }
  0xb4   :  { %v152_v17 = vmax.f32 %v150_v16, 0.0 }
  0xb6   :  { %154 = vst [vmem:[#allocation8 + $0x8] sm:$0xff] %v152_v17 }
  0xb7   :  { %167 = dma.vmem_to_hbm [thread:$0]  %s160_s27, 256, %s162_s30, [#allocation5], %s302_s20, %s302_s20, %s303_s21  }
  0xb8   :  { %299 = dma.done.wait [#allocation5], 256  }
  0xb9   :  { %300 = vsyncadd [#allocation5], 4294967040 }
  0xba   :  { %172 = vsyncpa [#allocation4], 1 }
  0xbb   :  { %173 = vsyncpa [#allocation7], 1 }
  0xbc   :  { %174 = vsyncpa [#allocation5], 1 }

</bundles_post_ra>
